<compile_context>
chip_gen: v5e
topology: v5e:2x2
jax: 0.10.0
libtpu: 0.0.40
codegen_flags: <defaults>
</compile_context>

<pallas_src>
import jax
import jax.numpy as jnp
from jax import lax
from jax.experimental import pallas as pl
from jax.experimental.pallas import tpu as pltpu

_TARGET_BLOCK_BYTES = 4 << 20   # ~4 MiB per block (x4 when double-buffered in+out)
_MIN_PALLAS_BYTES = 2 << 20     # below this, XLA's native slice-copy wins
_MAX_LANE_TILE_BYTES = 8 << 10  # per-row lane-tile cap: 2048 f32 / 4096 bf16 / 8192 i8


def _copy_kernel(x_ref, o_ref):
    # Same-shape block copy; the chomp is expressed via the grid/BlockSpecs.
    o_ref[...] = x_ref[...]


def _round_down(v, m):
    return (v // m) * m


def _dimension_semantics(num_row_tiles):
    # v7x has 2 TensorCores/chip: shard the independent row-tile axis across
    # them.  Single-TC chips (v5e/v6e) use plain "parallel" (no-op, harmless).
    core_parallel = getattr(pltpu, "CORE_PARALLEL", None)
    try:
        kind = jax.devices()[0].device_kind.lower()
    except Exception:
        kind = ""
    is_v7 = ("v7" in kind) or ("tpu7" in kind)
    if core_parallel is not None and is_v7 and num_row_tiles >= 2:
        return (core_parallel, pltpu.PARALLEL)
    return ("parallel", "parallel")


def chomp1d(x: jax.Array, chomp_size: int, *, force_pallas: bool = False) -> jax.Array:
    """Pallas equivalent of Chomp1d(chomp_size).forward(x) for x of shape (N, C, L)."""
    n, c, l = x.shape
    if not (0 < chomp_size < l):
        # PyTorch's x[:, :, :-k] with k >= L gives an empty tensor; reject as a
        # configuration error for this kernel (k == 0 likewise).
        raise ValueError("chomp_size must satisfy 0 < chomp_size < L")
    l_out = l - chomp_size

    rows = n * c
    itemsize = jnp.dtype(x.dtype).itemsize
    out_bytes = rows * l_out * itemsize

    # --- Bypass: tiny slabs are dominated by fixed pallas_call overhead, and
    # l_out < 128 forces masked partial stores + wasted tail reads.  XLA's
    # native slice-copy is the right tool there.
    if l_out < 128 or (out_bytes < _MIN_PALLAS_BYTES and not force_pallas):
        return lax.slice_in_dim(x, 0, l_out, axis=2)

    # Collapse (N, C) into one sublane axis.  Free for a contiguous (N, C, L)
    # row-major input; a strided/transposed view would force XLA to
    # materialize a copy first.
    x2 = x.reshape(rows, l)

    # --- Lane tile.  Prefer covering the whole output lane axis in one block
    # (fully contiguous writeback per row tile, no masked remainder tile) when
    # l_out is a multiple of 128 (the input BlockSpec tiling rule) and a
    # minimal 8-row block still fits the byte budget.  Otherwise use
    # 128-multiple tiles capped by a dtype-aware per-row byte budget.
    if l_out % 128 == 0 and 8 * l_out * itemsize <= _TARGET_BLOCK_BYTES:
        tl = l_out
    else:
        tl_cap = max(128, _round_down(_MAX_LANE_TILE_BYTES // itemsize, 128))
        tl = min(_round_down(l_out, 128), tl_cap)

    # --- Row tile from the remaining block byte budget: multiple of 8, or the
    # full row extent when everything fits (block dim == full dim is legal).
    tr = _TARGET_BLOCK_BYTES // (tl * itemsize)
    if tr >= rows:
        tr = rows
    else:
        tr = max(8, _round_down(tr, 8))

    grid = (pl.cdiv(rows, tr), pl.cdiv(l_out, tl))

    # Double-buffered in + out blocks, plus headroom for compiler scratch.
    block_bytes = tr * tl * itemsize
    vmem_limit = int(max(32 << 20, 2 * 2 * block_bytes + (4 << 20)))

    # Pure bandwidth op: read + write only the kept l_out columns.
    cost = pl.CostEstimate(
        flops=0,
        transcendentals=0,
        bytes_accessed=2 * rows * l_out * itemsize,
    )

    y2 = pl.pallas_call(
        _copy_kernel,
        out_shape=jax.ShapeDtypeStruct((rows, l_out), x.dtype),
        grid=grid,
        in_specs=[pl.BlockSpec((tr, tl), lambda i, j: (i, j))],
        out_specs=pl.BlockSpec((tr, tl), lambda i, j: (i, j)),
        compiler_params=pltpu.CompilerParams(
            dimension_semantics=_dimension_semantics(grid[0]),
            vmem_limit_bytes=vmem_limit,
        ),
        cost_estimate=cost,
    )(x2)

    return y2.reshape(n, c, l_out)


if __name__ == "__main__":
    key = jax.random.PRNGKey(0)
    k1, k2, k3 = jax.random.split(key, 3)

    # Case 1: small shape implied by the module (NCL, like Conv1d activations).
    # Tiny and l_out < 128 -> takes the XLA-slice bypass path.
    N, C, L, chomp = 2, 4, 16, 3  # e.g. padding of a causal conv, kernel_size=4
    x = jax.random.normal(k1, (N, C, L), dtype=jnp.float32)
    y = chomp1d(x, chomp)
    jax.block_until_ready(y)
    assert y.shape == (N, C, L - chomp)
    assert jnp.array_equal(y, x[:, :, :-chomp])

    # Case 2: Pallas fast path with tl == l_out (single contiguous lane block,
    # one contiguous writeback burst per row tile).
    N2, C2, L2, chomp2 = 2, 8, 259, 3  # l_out = 256
    x2 = jax.random.normal(k2, (N2, C2, L2), dtype=jnp.float32)
    y2 = chomp1d(x2, chomp2, force_pallas=True)
    jax.block_until_ready(y2)
    assert y2.shape == (N2, C2, L2 - chomp2)
    assert jnp.array_equal(y2, x2[:, :, :-chomp2])

    # Case 3: odd l_out >= 128 -> 128-multiple lane tiles with a masked
    # remainder tile (exercises the partial-tile path of the fast kernel).
    N3, C3, L3, chomp3 = 2, 8, 300, 3  # l_out = 297
    x3 = jax.random.normal(k3, (N3, C3, L3), dtype=jnp.float32)
    y3 = chomp1d(x3, chomp3, force_pallas=True)
    jax.block_until_ready(y3)
    assert y3.shape == (N3, C3, L3 - chomp3)
    assert jnp.array_equal(y3, x3[:, :, :-chomp3])

    print("KERNEL_OK")
</pallas_src>

<mosaic_0001>
module attributes {stable_mosaic.version = 11 : i64} {
  func.func @_copy_kernel(%arg0: i32, %arg1: i32, %arg2: memref<16x256xf32, #tpu.memory_space<vmem>>, %arg3: memref<16x256xf32, #tpu.memory_space<vmem>>) attributes {dimension_semantics = [#tpu.dimension_semantics<parallel>, #tpu.dimension_semantics<parallel>], iteration_bounds = array<i64: 1, 1>, scalar_prefetch = 0 : i64, scratch_operands = 0 : i64, tpu.core_type = #tpu.core_type<tc>, window_params = [{transform_indices = @transform_0, window_bounds = array<i64: 16, 256>}, {transform_indices = @transform_1, window_bounds = array<i64: 16, 256>}]} {
    %c0 = arith.constant 0 : index
    %c0_0 = arith.constant 0 : index
    %0 = vector.load %arg2[%c0, %c0_0] : memref<16x256xf32, #tpu.memory_space<vmem>>, vector<16x256xf32>
    %c0_1 = arith.constant 0 : index
    %c0_2 = arith.constant 0 : index
    %1 = vector.load %arg3[%c0_1, %c0_2] : memref<16x256xf32, #tpu.memory_space<vmem>>, vector<16x256xf32>
    tpu.vector_store %arg3[%c0_1, %c0_2], %0 {strides = array<i32>} : memref<16x256xf32, #tpu.memory_space<vmem>>, vector<16x256xf32>,
    return
  }
  func.func @transform_0(%arg0: i32, %arg1: i32) -> (i32, i32) {
    %c0_i32 = arith.constant 0 : i32
    return %arg0, %arg1 : i32, i32
  }
  func.func @transform_1(%arg0: i32, %arg1: i32) -> (i32, i32) {
    %c0_i32 = arith.constant 0 : i32
    return %arg0, %arg1 : i32, i32
  }
}

</mosaic_0001>

<bundles_post_ra>
// kernel: tpu_custom_call.1
= control target key start
LH: loop header
LB: loop body
LE: loop exit
PB: predicated region body
PF: predicated region fallthrough
CT: control target
= control target key end

     0   :  { %6 = vsyncpa [#allocation3], 0  ;;  %s130_s0 = inlined_call_operand.hbm [shape: f32[16,259], index: 0, kind: input, shape index: {}]   ;;  %s131_s1 = inlined_call_operand.hbm [shape: f32[16,256], index: 1, kind: output, shape index: {}]  }
   0x1   :  { %7 = vsyncpa [#allocation4], 0  ;;  %s12_s8 = sshll.u32 %s130_s0, 4  ;;  %s109_s9 = smov [#allocation2]   ;;  %s13_s8 = int_to_ptr.hbm [resolvable:$true] %s12_s8 }
   0x2   :  { %s14_s10 = sshll.u32 %s109_s9, 4  ;;  %s110_s11 = smov 384   ;;  %s15_s10 = int_to_ptr.vmem [resolvable:$true] %s14_s10 }
   0x3   :  { %s111_s12 = smov 256   ;;  %s112_s13 = smov 16  }
   0x4   :  { %20 = dma.hbm_to_vmem [thread:$0]  %s13_s8, 512, %s15_s10, [#allocation3], %s110_s11, %s111_s12, %s112_s13  }
   0x5   :  { %105 = dma.done.wait [#allocation3], 512  }
   0x6   :  { %106 = vsyncadd [#allocation3], 4294966784  ;;  %s113_s14 = smov [#allocation5]   ;;  %s39_s18 = sshll.u32 %s131_s1, 4  ;;  %v25_v0 = vld [vmem:[#allocation2] sm:$0xff]  ;;  %v26_v1 = vld [vmem:[#allocation2 + $0x8] sm:$0xff]  ;;  %s40_s18 = int_to_ptr.hbm [resolvable:$true] %s39_s18 }
   0x7   :  { %s37_s15 = sshll.u32 %s113_s14, 4  ;;  %v27_v2 = vld [vmem:[#allocation2 + $0x10] sm:$0xff]  ;;  %29 = vst [vmem:[#allocation5] sm:$0xff] %v25_v0  ;;  %v28_v3 = vld [vmem:[#allocation2 + $0x18] sm:$0xff]  ;;  %s38_s15 = int_to_ptr.vmem [resolvable:$true] %s37_s15 }
   0x8   :  { %30 = vst [vmem:[#allocation5 + $0x8] sm:$0xff] %v26_v1 }
   0x9   :  { %31 = vst [vmem:[#allocation5 + $0x10] sm:$0xff] %v27_v2 }
   0xa   :  { %32 = vst [vmem:[#allocation5 + $0x18] sm:$0xff] %v28_v3 }
   0xb   :  { %45 = dma.vmem_to_hbm [thread:$0]  %s38_s15, 512, %s40_s18, [#allocation4], %s111_s12, %s111_s12, %s112_s13  }
   0xc   :  { %107 = dma.done.wait [#allocation4], 512  }
   0xd   :  { %108 = vsyncadd [#allocation4], 4294966784 }
   0xe   :  { %50 = vsyncpa [#allocation3], 1 }
   0xf   :  { %51 = vsyncpa [#allocation4], 1 }

</bundles_post_ra>
